<compile_context>
chip_gen: v7x
topology: tpu7x:2x2x1
jax: 0.10.0
libtpu: 0.0.40
codegen_flags: <defaults>
</compile_context>

<pallas_src>
import functools

import numpy as np
import jax
import jax.numpy as jnp
from jax.experimental import pallas as pl
from jax.experimental.pallas import tpu as pltpu


def _round_up(x, m):
    return ((x + m - 1) // m) * m


# ----------------------------------------------------------------------------
# Pallas kernel 1: merged strip convolutions (all four branches, one call)
# ----------------------------------------------------------------------------
def _strip_kernel(bid_ref, a_ref, w_ref, s_ref, o_ref, *, relu):
    """o = [relu](a @ w + s); a:(tr, L*Cin) bf16, w:(L*Cin, L*Cout) bf16."""
    del bid_ref  # consumed only by the index_maps (per-tile branch selection)
    y = jnp.dot(a_ref[...], w_ref[...], preferred_element_type=jnp.float32)
    y = y + s_ref[...]
    if relu:
        y = jnp.maximum(y, 0.0)
    o_ref[...] = y.astype(o_ref.dtype)


def strip_convs_merged(rows_list, wband_list, shift_list, relu=True, tr=None):
    """All strip-conv branches in ONE pallas_call.

    rows_list[b]:  (R_b, L*Cin)   unpadded, flattened strip rows (f32).
    wband_list[b]: (L*Cin, L*Cout) banded weight, boundary taps clipped
                                   (BN scale already folded in).
    shift_list[b]: (L*Cout,)       per-column shift (bias [+ BN] folded).
    Returns a list of (R_b, L*Cout) f32 outputs.
    """
    LCi = rows_list[0].shape[1]
    LCo = wband_list[0].shape[1]
    # TODO(synk): the banded weight is O(L^2 * Cin * Cout); for production
    # L*Cin (e.g. Cin=64, L=128) switch to an im2col formulation (contraction
    # 9*Cin, grid over L-chunks) -- this path is only for small strips.
    assert LCi * LCo * 2 <= 8 * 1024 * 1024, (
        "banded strip weight too large; use an im2col formulation instead")

    if tr is None:
        # Size the row tile from the actual branch row counts (perf review):
        # small enough that padding waste is tiny and the grid has many steps,
        # multiple of 8 for sublane alignment.
        tr = max(8, min(128, _round_up(min(r.shape[0] for r in rows_list), 8)))

    padded, bids, meta = [], [], []
    off = 0
    for b, rows in enumerate(rows_list):
        R = rows.shape[0]
        Rp = _round_up(R, tr)
        if Rp != R:
            rows = jnp.pad(rows, ((0, Rp - R), (0, 0)))
        padded.append(rows)
        bids += [b] * (Rp // tr)
        meta.append((off, R))
        off += Rp

    # bf16 operands (f32 accumulation inside the kernel) per the perf review.
    A = jnp.concatenate(padded, axis=0).astype(jnp.bfloat16)        # (Rtot, LCi)
    W = jnp.stack(wband_list, axis=0).astype(jnp.bfloat16)          # (B, LCi, LCo)
    S = jnp.stack([s.reshape(1, LCo) for s in shift_list], 0).astype(jnp.float32)
    bid = jnp.asarray(bids, jnp.int32)                               # per-tile branch id
    ntiles = len(bids)

    out = pl.pallas_call(
        functools.partial(_strip_kernel, relu=relu),
        out_shape=jax.ShapeDtypeStruct((off, LCo), jnp.float32),
        grid_spec=pltpu.PrefetchScalarGridSpec(
            num_scalar_prefetch=1,
            grid=(ntiles,),
            in_specs=[
                pl.BlockSpec((tr, LCi), lambda i, b: (i, 0)),
                pl.BlockSpec((None, LCi, LCo), lambda i, b: (b[i], 0, 0)),
                pl.BlockSpec((None, 1, LCo), lambda i, b: (b[i], 0, 0)),
            ],
            out_specs=pl.BlockSpec((tr, LCo), lambda i, b: (i, 0)),
        ),
        compiler_params=pltpu.CompilerParams(dimension_semantics=("parallel",)),
    )(bid, A, W, S)
    return [out[o:o + R] for (o, R) in meta]


# ----------------------------------------------------------------------------
# Pallas kernel 2: conv3 + bn3 + relu3 + residual sum, channels-first
# (pixels on the 128-lane axis -> lane-dense loads/stores, emits NCHW directly)
# ----------------------------------------------------------------------------
def _conv1x1_cf_res_kernel(a_ref, w_ref, s_ref, r_ref, o_ref):
    # a:(Cin, mt) bf16, w:(Cout, Cin) bf16, s:(Cout, 1) f32, r:(Cout, mt) f32
    y = jnp.dot(w_ref[...], a_ref[...], preferred_element_type=jnp.float32)
    y = jnp.maximum(y + s_ref[...], 0.0)
    o_ref[...] = (y + r_ref[...]).astype(o_ref.dtype)


def conv1x1_bn_relu_add_cf(x_cf, w, shift, res_cf, mt=None):
    """relu((w @ x) + shift) + res, channels-first: x_cf (N, Cin, P) -> (N, Cout, P)."""
    N, Cin, P = x_cf.shape
    Cout = w.shape[0]
    if mt is None:
        # >= 4 grid steps at the demo shapes (v7x megacore + pipelining).
        mt = 128 if (P % 128 == 0 and P > 128) else P
    out = pl.pallas_call(
        _conv1x1_cf_res_kernel,
        out_shape=jax.ShapeDtypeStruct((N, Cout, P), jnp.float32),
        grid_spec=pltpu.PrefetchScalarGridSpec(
            num_scalar_prefetch=0,
            grid=(N, P // mt),
            in_specs=[
                pl.BlockSpec((None, Cin, mt), lambda n, j: (n, 0, j)),
                pl.BlockSpec((Cout, Cin), lambda n, j: (0, 0)),
                pl.BlockSpec((Cout, 1), lambda n, j: (0, 0)),
                pl.BlockSpec((None, Cout, mt), lambda n, j: (n, 0, j)),
            ],
            out_specs=pl.BlockSpec((None, Cout, mt), lambda n, j: (n, 0, j)),
        ),
        compiler_params=pltpu.CompilerParams(
            dimension_semantics=("parallel", "parallel")),
    )(x_cf.astype(jnp.bfloat16), w.astype(jnp.bfloat16),
      shift.reshape(Cout, 1).astype(jnp.float32), res_cf.astype(jnp.float32))
    return out


# ----------------------------------------------------------------------------
# Trace-time weight transforms (banded strip weight without halo, BN folding)
# ----------------------------------------------------------------------------
def bn_fold(gamma, beta, mean, var, conv_bias, eps=1e-5):
    s = gamma / jnp.sqrt(var + eps)
    return s, s * (conv_bias - mean) + beta


def banded_strip_weight(wk, scale, L, pad):
    """wk: (Cout, Cin, K) taps along the strip axis (torch cross-correlation order).
    Returns W:(L*Cin, L*Cout) so that unpadded_flat_row @ W gives all L output
    positions at once.  Boundary taps are clipped (identical to zero-padding).
    Per-output-channel BN `scale` is folded into the columns."""
    Cout, Cin, K = wk.shape
    taps = jnp.transpose(wk, (2, 1, 0)) * scale[None, None, :]      # (K, Cin, Cout)
    kk = np.arange(K)[:, None, None]
    pp = np.arange(L)[None, :, None]
    qq = np.arange(L)[None, None, :]
    sel = (qq == pp + kk - pad).astype(np.float32)                  # (K, L, L), static
    band = jnp.einsum('kpq,kio->qipo', jnp.asarray(sel), taps)      # (L, Cin, L, Cout)
    return band.reshape(L * Cin, L * Cout)


# ----------------------------------------------------------------------------
# h/v skew transforms (NHWC ports of the torch reshape/pad tricks; pure glue)
# ----------------------------------------------------------------------------
def h_transform_nhwc(x):
    N, H, W, C = x.shape
    xp = jnp.pad(x, ((0, 0), (0, 0), (0, W), (0, 0)))
    xf = xp.reshape(N, H * 2 * W, C)[:, :-W, :]
    return xf.reshape(N, H, 2 * W - 1, C)


def inv_h_transform_nhwc(x):
    N, H, L, C = x.shape                       # L == 2H-1 (H == W required)
    xf = x.reshape(N, H * L, C)
    xf = jnp.pad(xf, ((0, 0), (0, H), (0, 0)))
    return xf.reshape(N, H, 2 * H, C)[:, :, :H, :]


def v_transform_nhwc(x):
    x = jnp.transpose(x, (0, 2, 1, 3))         # (N, W, H, C)
    N, W, H, C = x.shape
    xp = jnp.pad(x, ((0, 0), (0, 0), (0, H), (0, 0)))
    xf = xp.reshape(N, W * 2 * H, C)[:, :-H, :]
    xr = xf.reshape(N, W, 2 * H - 1, C)
    return jnp.transpose(xr, (0, 2, 1, 3))     # (N, 2H-1, W, C)


def inv_v_transform_nhwc(x):
    x = jnp.transpose(x, (0, 2, 1, 3))         # (N, W, 2H-1, C)
    N, W, L, C = x.shape
    xf = x.reshape(N, W * L, C)
    xf = jnp.pad(xf, ((0, 0), (0, W), (0, 0)))
    xr = xf.reshape(N, W, 2 * W, C)[:, :, :W, :]
    return jnp.transpose(xr, (0, 2, 1, 3))     # (N, H, W, C)


# ----------------------------------------------------------------------------
# Placeholders for externally-defined submodules
# ----------------------------------------------------------------------------
def sea_attention(x):
    # TODO(synk): Sea_Attention definition not provided in the source module; treated as identity.
    return x


# AFF definition not provided in the source module; implemented as an
# elementwise sum and FUSED into the final Pallas conv3 kernel.
# TODO(synk): replace with the real AFF once its definition is available.


# ----------------------------------------------------------------------------
# Parameter init (deterministic, synthetic)
# ----------------------------------------------------------------------------
def init_params(key, in_channels, n_filters):
    cq = in_channels // 4
    keys = iter(jax.random.split(key, 32))

    def nrm(shape, scale=0.1):
        return scale * jax.random.normal(next(keys), shape, jnp.float32)

    def bn(c):
        return (1.0 + nrm((c,)), nrm((c,)), nrm((c,)),
                1.0 + 0.1 * jnp.abs(jax.random.normal(next(keys), (c,), jnp.float32)))

    p = {}
    p['conv1_w'], p['conv1_b'] = nrm((cq, in_channels, 1, 1)), nrm((cq,))
    p['bn1_g'], p['bn1_b'], p['bn1_m'], p['bn1_v'] = bn(cq)
    p['deconv1_w'], p['deconv1_b'] = nrm((cq, cq, 1, 9)), nrm((cq,))
    p['deconv2_w'], p['deconv2_b'] = nrm((cq, cq, 9, 1)), nrm((cq,))
    p['deconv3_w'], p['deconv3_b'] = nrm((cq, cq, 9, 1)), nrm((cq,))
    p['deconv4_w'], p['deconv4_b'] = nrm((cq, cq, 1, 9)), nrm((cq,))
    p['bn2_g'], p['bn2_b'], p['bn2_m'], p['bn2_v'] = bn(in_channels)
    p['conv3_w'], p['conv3_b'] = nrm((n_filters, in_channels, 1, 1)), nrm((n_filters,))
    p['bn3_g'], p['bn3_b'], p['bn3_m'], p['bn3_v'] = bn(n_filters)
    return p


# ----------------------------------------------------------------------------
# StripConvBlock forward (eval-mode BatchNorm folded at trace time)
# ----------------------------------------------------------------------------
def strip_conv_block_forward(x, p, fold_bn2_into_branches=True):
    N, C, H, W = x.shape
    assert H == W, "skew (h/v) transforms of the reference module require H == W"
    cq = C // 4
    pad_ = 4
    L = W                                   # strip length for all four branches
    nf = p['conv3_w'].shape[0]
    assert nf == C, "AFF residual sum (stub) requires n_filters == in_channels"

    x_nhwc = jnp.transpose(x, (0, 2, 3, 1))          # single NCHW->NHWC transpose

    # conv1 + bn1 + relu1: tiny 1x1 (C -> C/4 per pixel).  Left to XLA per the
    # perf review -- it fuses with the surrounding layout glue and avoids a
    # launch-bound, 4-lane-output pallas_call.
    s1, sh1 = bn_fold(p['bn1_g'], p['bn1_b'], p['bn1_m'], p['bn1_v'], p['conv1_b'])
    w1 = jnp.transpose(p['conv1_w'][:, :, 0, 0], (1, 0)) * s1[None, :]   # (C, cq)
    h4 = jax.nn.relu(jnp.einsum('nhwc,cd->nhwd', x_nhwc, w1) + sh1)      # (N,H,W,cq)

    # Strip rows for the four branches, NO halo padding (the banded weight
    # clips boundary taps instead).  rows1 is a pure reshape of h4.
    rows1 = h4.reshape(N * H, W * cq)                                              # deconv1 (1,9)
    rows2 = jnp.transpose(h4, (0, 2, 1, 3)).reshape(N * W, H * cq)                 # deconv2 (9,1)
    ht = h_transform_nhwc(h4)                                                      # (N,H,2W-1,cq)
    rows3 = jnp.transpose(ht, (0, 2, 1, 3)).reshape(N * (2 * W - 1), H * cq)       # deconv3 (9,1)
    vt = v_transform_nhwc(h4)                                                      # (N,2H-1,W,cq)
    rows4 = vt.reshape(N * (2 * H - 1), W * cq)                                    # deconv4 (1,9)

    # Banded weights and per-column shifts.  bn2+relu2 folding into the
    # branches is only equivalent to the torch ordering while Sea_Attention is
    # an identity stub -- hence the explicit flag.
    wk = [p['deconv1_w'][:, :, 0, :], p['deconv2_w'][:, :, :, 0],
          p['deconv3_w'][:, :, :, 0], p['deconv4_w'][:, :, 0, :]]
    biases = [p['deconv1_b'], p['deconv2_b'], p['deconv3_b'], p['deconv4_b']]
    wband, shifts = [], []
    for b in range(4):
        if fold_bn2_into_branches:
            sl = slice(b * cq, (b + 1) * cq)
            s, sh = bn_fold(p['bn2_g'][sl], p['bn2_b'][sl],
                            p['bn2_m'][sl], p['bn2_v'][sl], biases[b])
        else:
            s, sh = jnp.ones((cq,), jnp.float32), biases[b]
        wband.append(banded_strip_weight(wk[b], s, L, pad_))
        shifts.append(jnp.tile(sh, L))

    outs = strip_convs_merged([rows1, rows2, rows3, rows4], wband, shifts,
                              relu=fold_bn2_into_branches)

    # Un-flatten branch outputs back to NHWC (sea_attn stubbed as identity).
    x1 = sea_attention(outs[0].reshape(N, H, W, cq))
    x2 = sea_attention(jnp.transpose(outs[1].reshape(N, W, H, cq), (0, 2, 1, 3)))
    x3 = sea_attention(inv_h_transform_nhwc(
        jnp.transpose(outs[2].reshape(N, 2 * W - 1, H, cq), (0, 2, 1, 3))))
    x4 = sea_attention(inv_v_transform_nhwc(outs[3].reshape(N, 2 * H - 1, W, cq)))

    xc = jnp.concatenate([x1, x2, x3, x4], axis=-1)          # (N, H, W, 4*cq)
    if not fold_bn2_into_branches:
        s2 = p['bn2_g'] / jnp.sqrt(p['bn2_v'] + 1e-5)
        xc = jax.nn.relu(xc * s2 + (p['bn2_b'] - s2 * p['bn2_m']))

    # conv3 + bn3 + relu3 + AFF(residual sum), fused in one channels-first
    # Pallas call: pixels live on the 128-lane axis (lane-dense loads/stores)
    # and the kernel emits the final NCHW layout directly.
    s3, sh3 = bn_fold(p['bn3_g'], p['bn3_b'], p['bn3_m'], p['bn3_v'], p['conv3_b'])
    w3 = p['conv3_w'][:, :, 0, 0] * s3[:, None]               # (nf, C), scale folded
    xc_cf = jnp.transpose(xc, (0, 3, 1, 2)).reshape(N, C, H * W)
    res_cf = x.reshape(N, C, H * W)
    out_cf = conv1x1_bn_relu_add_cf(xc_cf, w3, sh3, res_cf)
    return out_cf.reshape(N, nf, H, W)                        # already NCHW


if __name__ == "__main__":
    in_channels, n_filters = 16, 16   # n_filters == in_channels so residual fusion is shape-valid
    N, H, W = 2, 16, 16               # h/v transforms require H == W (as in the torch code)

    key = jax.random.PRNGKey(0)
    kx, kp = jax.random.split(key)
    x = jax.random.normal(kx, (N, in_channels, H, W), jnp.float32)
    params = init_params(kp, in_channels, n_filters)

    fwd = jax.jit(strip_conv_block_forward)
    out = fwd(x, params)
    jax.block_until_ready(out)
    assert out.shape == (N, n_filters, H, W)
    assert bool(jnp.all(jnp.isfinite(out)))
    print("KERNEL_OK")
</pallas_src>

<mosaic_0001>
module attributes {stable_mosaic.version = 11 : i64} {
  func.func @_strip_kernel(%arg0: i32, %arg1: memref<6xi32, #tpu.memory_space<smem>>, %arg2: memref<32x64xbf16, #tpu.memory_space<vmem>>, %arg3: memref<1x64x64xbf16, #tpu.memory_space<vmem>>, %arg4: memref<1x1x64xf32, #tpu.memory_space<vmem>>, %arg5: memref<32x64xf32, #tpu.memory_space<vmem>>) attributes {dimension_semantics = [#tpu.dimension_semantics<parallel>], iteration_bounds = array<i64: 6>, scalar_prefetch = 1 : i64, scratch_operands = 0 : i64, tpu.core_type = #tpu.core_type<tc>, window_params = [{transform_indices = @transform_0, window_bounds = array<i64: 32, 64>}, {transform_indices = @transform_1, window_bounds = array<i64: 1, 64, 64>}, {transform_indices = @transform_2, window_bounds = array<i64: 1, 1, 64>}, {transform_indices = @transform_3, window_bounds = array<i64: 32, 64>}]} {
    %c0 = arith.constant 0 : index
    %c0_0 = arith.constant 0 : index
    %0 = vector.load %arg2[%c0, %c0_0] : memref<32x64xbf16, #tpu.memory_space<vmem>>, vector<32x64xbf16>
    %c0_1 = arith.constant 0 : index
    %c0_2 = arith.constant 0 : index
    %c0_3 = arith.constant 0 : index
    %1 = vector.load %arg3[%c0_1, %c0_2, %c0_3] : memref<1x64x64xbf16, #tpu.memory_space<vmem>>, vector<1x64x64xbf16>
    %2 = vector.shape_cast %1 : vector<1x64x64xbf16> to vector<64x64xbf16>
    %cst = arith.constant dense<0.000000e+00> : vector<32x64xf32>
    %3 = tpu.matmul %0, %2, %cst {dimension_numbers = #tpu.dot_dimension_numbers<[1], [0], [0], [1], [0, 0, 1, 1], [], []>} : vector<32x64xbf16>, vector<64x64xbf16>, vector<32x64xf32> -> vector<32x64xf32>
    %c0_4 = arith.constant 0 : index
    %c0_5 = arith.constant 0 : index
    %c0_6 = arith.constant 0 : index
    %4 = vector.load %arg4[%c0_4, %c0_5, %c0_6] : memref<1x1x64xf32, #tpu.memory_space<vmem>>, vector<1x1x64xf32>
    %5 = vector.shape_cast %4 : vector<1x1x64xf32> to vector<1x64xf32>
    %6 = vector.broadcast %5 : vector<1x64xf32> to vector<32x64xf32>
    %7 = arith.addf %3, %6 : vector<32x64xf32>
    %cst_7 = arith.constant 0.000000e+00 : f32
    %8 = vector.broadcast %cst_7 : f32 to vector<32x64xf32>
    %9 = arith.maximumf %7, %8 : vector<32x64xf32>
    %c0_8 = arith.constant 0 : index
    %c0_9 = arith.constant 0 : index
    %10 = vector.load %arg5[%c0_8, %c0_9] : memref<32x64xf32, #tpu.memory_space<vmem>>, vector<32x64xf32>
    tpu.vector_store %arg5[%c0_8, %c0_9], %9 {strides = array<i32>} : memref<32x64xf32, #tpu.memory_space<vmem>>, vector<32x64xf32>,
    return
  }
  func.func @transform_0(%arg0: i32, %arg1: memref<6xi32, #tpu.memory_space<smem>>) -> (i32, i32) {
    %c0_i32 = arith.constant 0 : i32
    %c0_i32_0 = arith.constant 0 : i32
    return %arg0, %c0_i32 : i32, i32
  }
  func.func @transform_1(%arg0: i32, %arg1: memref<6xi32, #tpu.memory_space<smem>>) -> (i32, i32, i32) {
    %0 = arith.index_cast %arg0 : i32 to index
    %1 = memref.load %arg1[%0] : memref<6xi32, #tpu.memory_space<smem>>
    %c0_i32 = arith.constant 0 : i32
    %c0_i32_0 = arith.constant 0 : i32
    %c0_i32_1 = arith.constant 0 : i32
    return %1, %c0_i32, %c0_i32_0 : i32, i32, i32
  }
  func.func @transform_2(%arg0: i32, %arg1: memref<6xi32, #tpu.memory_space<smem>>) -> (i32, i32, i32) {
    %0 = arith.index_cast %arg0 : i32 to index
    %1 = memref.load %arg1[%0] : memref<6xi32, #tpu.memory_space<smem>>
    %c0_i32 = arith.constant 0 : i32
    %c0_i32_0 = arith.constant 0 : i32
    %c0_i32_1 = arith.constant 0 : i32
    return %1, %c0_i32, %c0_i32_0 : i32, i32, i32
  }
  func.func @transform_3(%arg0: i32, %arg1: memref<6xi32, #tpu.memory_space<smem>>) -> (i32, i32) {
    %c0_i32 = arith.constant 0 : i32
    %c0_i32_0 = arith.constant 0 : i32
    return %arg0, %c0_i32 : i32, i32
  }
}

module attributes {stable_mosaic.version = 11 : i64} {
  func.func @_conv1x1_cf_res_kernel(%arg0: i32, %arg1: i32, %arg2: memref<1x16x128xbf16, #tpu.memory_space<vmem>>, %arg3: memref<16x16xbf16, #tpu.memory_space<vmem>>, %arg4: memref<16x1xf32, #tpu.memory_space<vmem>>, %arg5: memref<1x16x128xf32, #tpu.memory_space<vmem>>, %arg6: memref<1x16x128xf32, #tpu.memory_space<vmem>>) attributes {dimension_semantics = [#tpu.dimension_semantics<parallel>, #tpu.dimension_semantics<parallel>], iteration_bounds = array<i64: 2, 2>, scalar_prefetch = 0 : i64, scratch_operands = 0 : i64, tpu.core_type = #tpu.core_type<tc>, window_params = [{transform_indices = @transform_0, window_bounds = array<i64: 1, 16, 128>}, {pipeline_mode = #tpu.pipeline_mode<synchronous>, transform_indices = @transform_1, window_bounds = array<i64: 16, 16>}, {pipeline_mode = #tpu.pipeline_mode<synchronous>, transform_indices = @transform_2, window_bounds = array<i64: 16, 1>}, {transform_indices = @transform_3, window_bounds = array<i64: 1, 16, 128>}, {transform_indices = @transform_4, window_bounds = array<i64: 1, 16, 128>}]} {
    %c0 = arith.constant 0 : index
    %c0_0 = arith.constant 0 : index
    %0 = vector.load %arg3[%c0, %c0_0] : memref<16x16xbf16, #tpu.memory_space<vmem>>, vector<16x16xbf16>
    %c0_1 = arith.constant 0 : index
    %c0_2 = arith.constant 0 : index
    %c0_3 = arith.constant 0 : index
    %1 = vector.load %arg2[%c0_1, %c0_2, %c0_3] : memref<1x16x128xbf16, #tpu.memory_space<vmem>>, vector<1x16x128xbf16>
    %2 = vector.shape_cast %1 : vector<1x16x128xbf16> to vector<16x128xbf16>
    %cst = arith.constant dense<0.000000e+00> : vector<16x128xf32>
    %3 = tpu.matmul %0, %2, %cst {dimension_numbers = #tpu.dot_dimension_numbers<[1], [0], [0], [1], [0, 0, 1, 1], [], []>} : vector<16x16xbf16>, vector<16x128xbf16>, vector<16x128xf32> -> vector<16x128xf32>
    %c0_4 = arith.constant 0 : index
    %c0_5 = arith.constant 0 : index
    %4 = vector.load %arg4[%c0_4, %c0_5] : memref<16x1xf32, #tpu.memory_space<vmem>>, vector<16x1xf32>
    %5 = vector.broadcast %4 : vector<16x1xf32> to vector<16x128xf32>
    %6 = arith.addf %3, %5 : vector<16x128xf32>
    %cst_6 = arith.constant 0.000000e+00 : f32
    %7 = vector.broadcast %cst_6 : f32 to vector<16x128xf32>
    %8 = arith.maximumf %6, %7 : vector<16x128xf32>
    %c0_7 = arith.constant 0 : index
    %c0_8 = arith.constant 0 : index
    %c0_9 = arith.constant 0 : index
    %9 = vector.load %arg5[%c0_7, %c0_8, %c0_9] : memref<1x16x128xf32, #tpu.memory_space<vmem>>, vector<1x16x128xf32>
    %10 = vector.shape_cast %9 : vector<1x16x128xf32> to vector<16x128xf32>
    %11 = arith.addf %8, %10 : vector<16x128xf32>
    %c0_10 = arith.constant 0 : index
    %c0_11 = arith.constant 0 : index
    %c0_12 = arith.constant 0 : index
    %12 = vector.load %arg6[%c0_10, %c0_11, %c0_12] : memref<1x16x128xf32, #tpu.memory_space<vmem>>, vector<1x16x128xf32>
    %13 = vector.shape_cast %12 : vector<1x16x128xf32> to vector<16x128xf32>
    %14 = vector.shape_cast %11 : vector<16x128xf32> to vector<1x16x128xf32>
    tpu.vector_store %arg6[%c0_10, %c0_11, %c0_12], %14 {strides = array<i32>} : memref<1x16x128xf32, #tpu.memory_space<vmem>>, vector<1x16x128xf32>,
    return
  }
  func.func @transform_0(%arg0: i32, %arg1: i32) -> (i32, i32, i32) {
    %c0_i32 = arith.constant 0 : i32
    %c0_i32_0 = arith.constant 0 : i32
    return %arg0, %c0_i32, %arg1 : i32, i32, i32
  }
  func.func @transform_1(%arg0: i32, %arg1: i32) -> (i32, i32) {
    %c0_i32 = arith.constant 0 : i32
    %c0_i32_0 = arith.constant 0 : i32
    %c0_i32_1 = arith.constant 0 : i32
    return %c0_i32, %c0_i32_0 : i32, i32
  }
  func.func @transform_2(%arg0: i32, %arg1: i32) -> (i32, i32) {
    %c0_i32 = arith.constant 0 : i32
    %c0_i32_0 = arith.constant 0 : i32
    %c0_i32_1 = arith.constant 0 : i32
    return %c0_i32, %c0_i32_0 : i32, i32
  }
  func.func @transform_3(%arg0: i32, %arg1: i32) -> (i32, i32, i32) {
    %c0_i32 = arith.constant 0 : i32
    %c0_i32_0 = arith.constant 0 : i32
    return %arg0, %c0_i32, %arg1 : i32, i32, i32
  }
  func.func @transform_4(%arg0: i32, %arg1: i32) -> (i32, i32, i32) {
    %c0_i32 = arith.constant 0 : i32
    %c0_i32_0 = arith.constant 0 : i32
    return %arg0, %c0_i32, %arg1 : i32, i32, i32
  }
}

</mosaic_0001>

<bundles_post_ra>
// kernel: tile.23
= control target key start
LH: loop header
LB: loop body
LE: loop exit
PB: predicated region body
PF: predicated region fallthrough
CT: control target
= control target key end

     0   :  { %s28_s0 = inlined_call_operand.vmem [shape: f32[4], index: 0, kind: input, shape index: {}]   ;;  %s29_s1 = inlined_call_operand.vmem [shape: f32[16,4], index: 1, kind: output, shape index: {}]  }
   0x1   :  { %v4_v0 = vld [vmem:[%s28_s0] ss:$0 sm:$0xff] }
   0x2   :  { %5 = vst [vmem:[%s29_s1] sm:$0xff] %v4_v0  ;;  %8 = vst [vmem:[%s29_s1 + $0x8] sm:$0xff] %v4_v0 }

// kernel: tile.36
= control target key start
LH: loop header
LB: loop body
LE: loop exit
PB: predicated region body
PF: predicated region fallthrough
CT: control target
= control target key end

     0   :  { %s131_s10 = smov 60   ;;  %s132_s11 = smov 52   ;;  %vm3_vm0 = vcmask 31744   ;;  %vm9_vm1 = vcmask 523744   ;;  %vm15_vm2 = vcmask 490944   ;;  %vm21_vm3 = vcmask 458144   ;;  %s207_s0 = inlined_call_operand.vmem [shape: f32[16,4], index: 0, kind: input, shape index: {}]   ;;  %s208_s1 = inlined_call_operand.vmem [shape: f32[1,1,64], index: 1, kind: output, shape index: {}]  }
   0x1   :  { %v101_v0 = vld [vmem:[%s207_s0 + $0xf] sm:$0x1]   ;;  %v103_v1 = vld [vmem:[%s207_s0 + $0xd] sm:$0x1]   ;;  %v102_v2 = vld [vmem:[%s207_s0 + $0xe] sm:$0x1]  }
   0x2   :  { %7 = vrot.lane.b32.xlu0 %v101_v0, %s131_s10  ;;  %19 = vrot.lane.b32.xlu1 %v103_v1, %s132_s11  ;;  %v104_v3 = vld [vmem:[%s207_s0 + $0xc] sm:$0x1]   ;;  %s133_s16 = smov 56   ;;  %s134_s17 = smov 48   ;;  %v105_v4 = vld [vmem:[%s207_s0 + $0xb] sm:$0x1]  }
   0x3   :  { %v106_v5 = vld [vmem:[%s207_s0 + $0xa] sm:$0x1]   ;;  %v2_v6 = vld [vmem:[%s207_s0] sm:$0x1]   ;;  %s135_s24 = smov 44   ;;  %s136_s25 = smov 40  }
   0x4   :  { %4 = vst.msk [vmem:[#allocation0] sm:$0x1] %vm3_vm0, %v2_v6   ;;  %v107_v7 = vld [vmem:[%s207_s0 + $0x9] sm:$0x1]   ;;  %v108_v8 = vld [vmem:[%s207_s0 + $0x8] sm:$0x1]  }
   0x5   :  { %s137_s30 = smov 36   ;;  %s138_s2 = smov 32   ;;  %v109_v9 = vld [vmem:[%s207_s0 + $0x7] sm:$0x1]   ;;  %v110_v10 = vld [vmem:[%s207_s0 + $0x6] sm:$0x1]  }
   0x6   :  { %13 = vrot.lane.b32.xlu0 %v102_v2, %s133_s16  ;;  %25 = vrot.lane.b32.xlu1 %v104_v3, %s134_s17  ;;  %s139_s7 = smov 28   ;;  %s140_s8 = smov 24   ;;  %v111_v11 = vld [vmem:[%s207_s0 + $0x5] sm:$0x1]   ;;  %v112_v12 = vld [vmem:[%s207_s0 + $0x4] sm:$0x1]  }
   0x7   :  { %s141_s13 = smov 20   ;;  %s142_s14 = smov 16   ;;  %v113_v13 = vld [vmem:[%s207_s0 + $0x3] sm:$0x1]   ;;  %v114_v14 = vld [vmem:[%s207_s0 + $0x2] sm:$0x1]  }
   0x8   :  { %s143_s19 = smov 12   ;;  %s144_s20 = smov 8   ;;  %v115_v15 = vld [vmem:[%s207_s0 + $0x1] sm:$0x1]   ;;  %vm27_vm4 = vcmask 425344   ;;  %vm33_vm5 = vcmask 392544  }
   0x9   :  { %s145_s0 = smov 4   ;;  %vm39_vm6 = vcmask 359744   ;;  %vm45_vm7 = vcmask 326944   ;;  %vm51_vm8 = vcmask 294144   ;;  %vm57_vm9 = vcmask 261344  }
   0xa   :  { %31 = vrot.lane.b32.xlu0 %v105_v4, %s135_s24  ;;  %37 = vrot.lane.b32.xlu1 %v106_v5, %s136_s25  ;;  %vm63_vm10 = vcmask 228544   ;;  %vm69_vm11 = vcmask 195744   ;;  %vm75_vm12 = vcmask 162944   ;;  %vm81_vm13 = vcmask 130144  }
   0xb   :  { %vm87_vm14 = vcmask 97344   ;;  %vm93_vm15 = vcmask 64544  }
   0xe   :  { %43 = vrot.lane.b32.xlu0 %v107_v7, %s137_s30  ;;  %49 = vrot.lane.b32.xlu1 %v108_v8, %s138_s2 }
  0x12   :  { %55 = vrot.lane.b32.xlu0 %v109_v9, %s139_s7  ;;  %61 = vrot.lane.b32.xlu1 %v110_v10, %s140_s8 }
  0x16   :  { %67 = vrot.lane.b32.xlu0 %v111_v11, %s141_s13  ;;  %73 = vrot.lane.b32.xlu1 %v112_v12, %s142_s14 }
  0x1a   :  { %79 = vrot.lane.b32.xlu0 %v113_v13, %s143_s19  ;;  %85 = vrot.lane.b32.xlu1 %v114_v14, %s144_s20 }
  0x1e   :  { %91 = vrot.lane.b32.xlu0 %v115_v15, %s145_s0 }
  0x74   :  { %v8_v16 = vpop.permute.xlu0 %7   ;;  %v20_v17 = vpop.permute.xlu1 %19  }
  0x75   :  { %10 = vst.msk [vmem:[#allocation0] sm:$0x1] %vm9_vm1, %v8_v16  }
  0x78   :  { %v14_v18 = vpop.permute.xlu0 %13   ;;  %v26_v19 = vpop.permute.xlu1 %25  }
  0x79   :  { %16 = vst.msk [vmem:[#allocation0] sm:$0x1] %vm15_vm2, %v14_v18  }
  0x7a   :  { %22 = vst.msk [vmem:[#allocation0] sm:$0x1] %vm21_vm3, %v20_v17  }
  0x7b   :  { %28 = vst.msk [vmem:[#allocation0] sm:$0x1] %vm27_vm4, %v26_v19  }
  0x7c   :  { %v32_v20 = vpop.permute.xlu0 %31   ;;  %v38_v21 = vpop.permute.xlu1 %37  }
  0x7d   :  { %34 = vst.msk [vmem:[#allocation0] sm:$0x1] %vm33_vm5, %v32_v20  }
  0x7e   :  { %40 = vst.msk [vmem:[#allocation0] sm:$0x1] %vm39_vm6, %v38_v21  }
  0x80   :  { %v44_v22 = vpop.permute.xlu0 %43   ;;  %v50_v23 = vpop.permute.xlu1 %49  }
  0x81   :  { %46 = vst.msk [vmem:[#allocation0] sm:$0x1] %vm45_vm7, %v44_v22  }
  0x82   :  { %52 = vst.msk [vmem:[#allocation0] sm:$0x1] %vm51_vm8, %v50_v23  }
  0x84   :  { %v56_v24 = vpop.permute.xlu0 %55   ;;  %v62_v25 = vpop.permute.xlu1 %61  }
  0x85   :  { %58 = vst.msk [vmem:[#allocation0] sm:$0x1] %vm57_vm9, %v56_v24  }
  0x86   :  { %64 = vst.msk [vmem:[#allocation0] sm:$0x1] %vm63_vm10, %v62_v25  }
  0x88   :  { %v68_v26 = vpop.permute.xlu0 %67   ;;  %v74_v27 = vpop.permute.xlu1 %73  }
  0x89   :  { %70 = vst.msk [vmem:[#allocation0] sm:$0x1] %vm69_vm11, %v68_v26  }
  0x8a   :  { %76 = vst.msk [vmem:[#allocation0] sm:$0x1] %vm75_vm12, %v74_v27  }
  0x8c   :  { %v80_v28 = vpop.permute.xlu0 %79   ;;  %v86_v29 = vpop.permute.xlu1 %85  }
  0x8d   :  { %82 = vst.msk [vmem:[#allocation0] sm:$0x1] %vm81_vm13, %v80_v28  }
  0x8e   :  { %88 = vst.msk [vmem:[#allocation0] sm:$0x1] %vm87_vm14, %v86_v29  }
  0x90   :  { %v92_v30 = vpop.permute.xlu0 %91  }
  0x91   :  { %94 = vst.msk [vmem:[#allocation0] sm:$0x1] %vm93_vm15, %v92_v30  }
  0x98   :  { %v98_v31 = vld [vmem:[#allocation0] sm:$0x1] }
  0x99   :  { %100 = vst [vmem:[%s208_s1] sm:$0x1] %v98_v31 }

// kernel: strip_conv_block_forward.2
= control target key start
LH: loop header
LB: loop body
LE: loop exit
PB: predicated region body
PF: predicated region fallthrough
CT: control target
= control target key end

     0   :  { %s569_s0 = inlined_call_operand.vmem [shape: s32[6], index: 0, kind: input, shape index: {}]   ;;  %s570_s1 = inlined_call_operand.vmem [shape: bf16[192,64], index: 1, kind: input, shape index: {}]   ;;  %s571_s2 = inlined_call_operand.vmem [shape: bf16[4,64,64], index: 2, kind: input, shape index: {}]   ;;  %s572_s3 = inlined_call_operand.vmem [shape: f32[4,1,64], index: 3, kind: input, shape index: {}]   ;;  %s573_s4 = inlined_call_operand.vmem [shape: f32[192,64], index: 4, kind: output, shape index: {}]  }
   0x1   :  { %s9_s17 = sshll.u32 %s569_s0, 4  ;;  %s10_s17 = int_to_ptr.vmem [resolvable:$true] %s9_s17 }
   0x2   :  { %s480_s18 = scalar_lea.vmem %s10_s17, 16  ;;  %p485_p1 = scmp.lt.s32.totalorder %s10_s17, %s10_s17 }
   0x3   :  { %p481_p0 = scmp.ne.s32.totalorder %s10_s17, %s480_s18  ;;  %p486_p2 = scmp.lt.s32.totalorder %s480_s18, %s480_s18 }
   0x5   :  { %p487_p3 = por %p486_p2, %p485_p1 }
   0x7   :  { %p488_p4 = pnand %p487_p3, %p481_p0 }
   0x9   :  { %491 = shalt.err (!%p488_p4)  }
   0xa   :  { %s502_s19 = smov [#allocation3]  }
   0xb   :  { %12 = dma.vmem_to_smem %s10_s17, 16, %s502_s19, [#allocation2] }
   0xc   :  { %496 = dma.done.wait [#allocation2], 16 }
   0xd   :  { %497 = vsyncadd [#allocation2], 4294967280 }
   0xe   :  { %14 = sfence }
   0xf   :  { %s531_s20 = smov 0  }
  0x10 LB: > { %s537_s0 = sadd.s32 4294967295, %s500_s20   ;;  %p428_p5 = scmp.ge.s32.totalorder %s500_s20, 1  ;;  %s500_s20 = sphi %s531_s20, %s20_s20  }
  0x11   : > { %p171_p6 = scmp.lt.s32.totalorder %s500_s20, 7 }
  0x13   : > { %p172_p7 = pnand %p428_p5, %p171_p6 }
  0x14   : > { %s211_s21 = sld [smem:[#allocation3 + %s537_s0]] (!%p172_p7)  ;;  %s429_s22 = sshll.u32 (!%p172_p7), %s537_s0, 2  ;;  %vm283_vm0 = vcmask (!%p172_p7), 523264  }
  0x15   : > { %175 = sbr.rel (%p172_p7) target bundleno = 269 (0x10d), region = 32  ;;  %p206_p8 = scmp.lt.s32.totalorder (!%p172_p7), %s429_s22, 23 }
  0x16   : > { %s218_s5 = sld [smem:[#allocation3 + %s537_s0]] (!%p172_p7) }
  0x1a   : > { %p212_p9 = scmp.lt.s32.totalorder (!%p172_p7), %s211_s21, 3 }
  0x1c   : > { %s575_s22 = smov (!%p206_p8, %s429_s22), 23  ;;  %s577_s21 = smov (!%p212_p9, %s211_s21), 3 }
  0x1d   : > { %s430_s23 = sshll.u32 %s575_s22, 2  ;;  %s446_s27 = sshll.u32 %s577_s21, 5 }
  0x1e   : > { %s209_s26 = scalar_lea.vmem %s570_s1, %s430_s23  ;;  %s216_s30 = scalar_lea.vmem %s571_s2, %s446_s27 }
  0x1f   : > { %v478_v0 = vld [vmem:[%s209_s26] sm:$0xff]   ;;  %v475_v2 = vld [vmem:[%s216_s30 + $0x8] sm:$0xff]   ;;  %v476_v3 = vld [vmem:[%s216_s30 + $0x10] sm:$0xff]   ;;  %p219_p10 = scmp.lt.s32.totalorder %s218_s5, 3  ;;  %s434_s9 = sshll.u32 %s575_s22, 3 }
  0x20   : > { %461 = vmatprep.mubr.msk.bf16.mxu0 %vm283_vm0, %v478_v0  ;;  %v474_v1 = vld [vmem:[%s216_s30] sm:$0xff]   ;;  %v477_v4 = vld [vmem:[%s216_s30 + $0x18] sm:$0xff]   ;;  %v479_v5 = vld [vmem:[%s209_s26 + $0x8] sm:$0xff]   ;;  %s227_s12 = scalar_lea.vmem %s573_s4, %s434_s9 }
  0x21   : > { %453 = vmatprep.subr.bf16.mxu0 %v474_v1  ;;  %s579_s5 = smov (!%p219_p10, %s218_s5), 3 }
  0x22   : > { %454 = vmatpush3.bf16.msra.mxu0 %v474_v1  ;;  %s221_s8 = scalar_lea.vmem %s572_s3, %s579_s5 }
  0x23   : > { %455 = vmatprep.subr.bf16.mxu0 %v475_v2  ;;  %v435_v6 = vld [vmem:[%s221_s8] ss:$0 sm:$0xff] }
  0x26   : > { %456 = vmatpush3.bf16.msra.mxu0 %v475_v2 }
  0x27   : > { %457 = vmatprep.subr.bf16.mxu0 %v476_v3 }
  0x2a   : > { %458 = vmatpush3.bf16.msra.mxu0 %v476_v3 }
  0x2b   : > { %459 = vmatprep.subr.bf16.mxu0 %v477_v4 }
  0x2e   : > { %460 = vmatpush3.bf16.msra.mxu0 %v477_v4 }
  0x31   : > { %462 = vmatmul.mubr.msk.bf16.vlgmr.msra.gmra.mrb[0].mxu0 %vm283_vm0, %v479_v5 }
 0x104   : > { %v463_v7 = vpop.f32.mrb[0].mxu0 }
 0x105   : > { %v333_v8 = vadd.f32 %v463_v7, %v435_v6  ;;  %v324_v9 = vpop.f32.mrb[1].mxu0 }
 0x106   : > { %v325_v10 = vadd.f32 %v435_v6, %v324_v9  ;;  %v464_v11 = vpop.f32.mrb[2].mxu0 }
 0x107   : > { %v341_v12 = vmax.f32 %v333_v8, 0.0  ;;  %v336_v13 = vadd.f32 %v464_v11, %v435_v6  ;;  %v327_v14 = vpop.f32.mrb[3].mxu0 }
 0x108   : > { %v339_v15 = vmax.f32 %v325_v10, 0.0  ;;  %v328_v16 = vadd.f32 %v435_v6, %v327_v14 }
 0x109   : > { %345 = vst.msk [vmem:[%s227_s12 + $0x10] sm:$0xff] %vm283_vm0, %v341_v12  ;;  %v342_v17 = vmax.f32 %v336_v13, 0.0 }
 0x10a   : > { %343 = vst.msk [vmem:[%s227_s12] sm:$0xff] %vm283_vm0, %v339_v15  ;;  %v340_v18 = vmax.f32 %v328_v16, 0.0 }
 0x10b   : > { %346 = vst.msk [vmem:[%s227_s12 + $0x18] sm:$0xff] %vm283_vm0, %v342_v17 }
 0x10c   : > { %344 = vst.msk [vmem:[%s227_s12 + $0x8] sm:$0xff] %vm283_vm0, %v340_v18 }
 0x10d PF: > { %s20_s20 = sadd.s32 1, %s500_s20  }
 0x10e   : > { %p17_p11 = scmp.ge.s32.totalorder %s20_s20, 8  }
 0x110   :  { %19 = sbr.rel (!%p17_p11) target bundleno = 16 (0x10), region = 68 }

// kernel: strip_conv_block_forward.3
= control target key start
LH: loop header
LB: loop body
LE: loop exit
PB: predicated region body
PF: predicated region fallthrough
CT: control target
= control target key end

     0   :  { %s713_s15 = smov 0   ;;  %s715_s16 = smov 0   ;;  %s832_s0 = inlined_call_operand.vmem [shape: bf16[2,16,256], index: 0, kind: input, shape index: {}]   ;;  %s833_s1 = inlined_call_operand.vmem [shape: bf16[16,16], index: 1, kind: input, shape index: {}]   ;;  %s834_s2 = inlined_call_operand.vmem [shape: f32[16,1], index: 2, kind: input, shape index: {}]   ;;  %s835_s3 = inlined_call_operand.vmem [shape: f32[2,16,256], index: 3, kind: input, shape index: {}]   ;;  %s836_s4 = inlined_call_operand.vmem [shape: f32[2,16,256], index: 4, kind: output, shape index: {}]  }
   0x1   :  { %s717_s17 = smov 0   ;;  %s719_s18 = smov 0  }
   0x2   :  { %s721_s19 = smov 0   ;;  %s723_s20 = smov 0  }
   0x3   :  { %s725_s21 = smov 0  }
   0x4 LB: > { %s23_s22 = sadd.s32 1, %s675_s19  ;;  %s26_s23 = sadd.s32 1, %s679_s20  ;;  %s683_s21 = sphi %s725_s21, %s14_s21   ;;  %s679_s20 = sphi %s723_s20, %s844_s20   ;;  %s675_s19 = sphi %s721_s19, %s843_s19   ;;  %s671_s18 = sphi %s719_s18, %s842_s18   ;;  %s667_s17 = sphi %s717_s17, %s841_s17   ;;  %s663_s16 = sphi %s715_s16, %s840_s16   ;;  %s659_s15 = sphi %s713_s15, %s839_s15  }
   0x5   : > { %p24_p0 = scmp.ge.s32.totalorder %s23_s22, 2  ;;  %s537_s24 = sadd.s32 4294967295, %s683_s21  }
   0x6   : > { %p42_p1 = scmp.ne.s32.totalorder %s663_s16, %s659_s15  ;;  %p43_p2 = scmp.eq.s32.totalorder %s683_s21, 0 }
   0x7   : > { %s846_s22 = smov (%p24_p0, %s23_s22), 0  ;;  %s848_s23 = smov (!%p24_p0, %s26_s23), %s679_s20 }
   0x8   : > { %p28_p3 = scmp.ge.s32.totalorder %s848_s23, 2  ;;  %p144_p4 = scmp.eq.s32.totalorder %s537_s24, 3 }
   0x9   : > { %s31_s25 = ssub.s32 %s675_s19, %s846_s22  ;;  %p759_p5 = por %p43_p2, %p42_p1 }
   0xa   : > { %s850_s23 = smov (%p28_p3, %s848_s23), 0  ;;  %p765_p6 = por %p144_p4, %p42_p1 }
   0xb   : > { %s30_s28 = ssub.s32 %s679_s20, %s850_s23  ;;  %s35_s30 = sadd.s32 1, %s663_s16 }
   0xc   : > { %s32_s29 = sor.u32 %s31_s25, %s30_s28  ;;  %p540_p8 = scmp.ge.s32.totalorder %s683_s21, 4 }
   0xd   : > { %p33_p7 = scmp.eq.s32.totalorder %s32_s29, 0 }
   0xe   : > { %172 = sbr.rel (%p540_p8) target bundleno = 35 (0x23), region = 24 }
   0xf   : > { %s773_s5 = scalar_select %p33_p7, %s663_s16, %s35_s30  }
  0x15   : > { %175 = sbr.rel (!%p759_p5) target bundleno = 28 (0x1c), region = 28  ;;  %s177_s6 = sand.u32 (%p759_p5), 1, %s663_s16  }
  0x16   : > { %s542_s7 = sshll.u32 (%p759_p5), %s679_s20, 2  ;;  %s541_s8 = sshll.u32 (%p759_p5), %s177_s6, 3 }
  0x17   : > { %s181_s9 = sadd.s32 (%p759_p5), %s675_s19, %s542_s7  ;;  %s179_s14 = scalar_lea.vmem (%p759_p5), [#allocation2], %s541_s8 }
  0x18   : > { %s543_s10 = sshll.u32 (%p759_p5), %s181_s9, 2 }
  0x19   : > { %s183_s13 = scalar_lea.vmem (%p759_p5), %s832_s0, %s543_s10 }
  0x1a   : > { %v199_v0 = vld [vmem:[%s183_s13] sm:$0xf] (%p759_p5)  ;;  %v201_v1 = vld [vmem:[%s183_s13 + $0x8] sm:$0xf] (%p759_p5) }
  0x1b   : > { %200 = vst [vmem:[%s179_s14] sm:$0xf] (%p759_p5), %v199_v0  ;;  %202 = vst [vmem:[%s179_s14 + $0x4] sm:$0xf] (%p759_p5), %v201_v1 }
  0x1c PF: > { %229 = sbr.rel (!%p759_p5) target bundleno = 35 (0x23), region = 69  ;;  %s231_s24 = sand.u32 (%p759_p5), 1, %s663_s16  }
  0x1d   : > { %s545_s25 = sshll.u32 (%p759_p5), %s679_s20, 2  ;;  %s544_s28 = sshll.u32 (%p759_p5), %s231_s24, 4 }
  0x1e   : > { %s235_s29 = sadd.s32 (%p759_p5), %s675_s19, %s545_s25  ;;  %s233_s8 = scalar_lea.vmem (%p759_p5), [#allocation3], %s544_s28 }
  0x1f   : > { %s546_s30 = sshll.u32 (%p759_p5), %s235_s29, 3 }
  0x20   : > { %s237_s9 = scalar_lea.vmem (%p759_p5), %s835_s3, %s546_s30 }
  0x21   : > { %v267_v2 = vld [vmem:[%s237_s9] sm:$0xff] (%p759_p5)  ;;  %v269_v3 = vld [vmem:[%s237_s9 + $0x10] sm:$0xff] (%p759_p5) }
  0x22   : > { %268 = vst [vmem:[%s233_s8] sm:$0xff] (%p759_p5), %v267_v2  ;;  %270 = vst [vmem:[%s233_s8 + $0x8] sm:$0xff] (%p759_p5), %v269_v3 }
  0x23 PF: > { %p547_p9 = scmp.ge.s32.totalorder %s683_s21, 1  ;;  %p275_p10 = scmp.lt.s32.totalorder %s683_s21, 5 }
  0x25   : > { %p276_p11 = pnand %p547_p9, %p275_p10 }
  0x26   : > { %s282_s26 = sand.u32 (!%p276_p11), 1, %s659_s15   ;;  %v685_v4 = vmov (!%p276_p11), 0.0   ;;  %vm686_vm0 = vmmov (!%p276_p11), 0   ;;  %v687_v5 = vmov (!%p276_p11), 0   ;;  %v322_v6 = vld [vmem:[%s834_s2] sm:$0xff] (!%p276_p11)  ;;  %v323_v9 = vld [vmem:[%s834_s2 + $0x8] sm:$0xff] (!%p276_p11) }
  0x27   : > { %279 = sbr.rel (%p276_p11) target bundleno = 274 (0x112), region = 107  ;;  %561 = vmatprep.subr.bf16.mxu0 (!%p276_p11), %v685_v4  ;;  %s548_s10 = sshll.u32 (!%p276_p11), %s282_s26, 3  ;;  %563 = vmatprep.mubr.msk.bf16.mxu0 (!%p276_p11), %vm686_vm0, %v685_v4  ;;  %v628_v8 = vld [vmem:[%s833_s1] sm:$0xff] (!%p276_p11)   ;;  %vm345_vm1 = vcmask (!%p276_p11), 130048  }
  0x28   : > { %626 = vset.pattern.permute.xlu0 (!%p276_p11), %v687_v5  ;;  %s284_s13 = scalar_lea.vmem (!%p276_p11), [#allocation2], %s548_s10  ;;  %s549_s28 = sshll.u32 (!%p276_p11), %s282_s26, 4 }
  0x29   : > { %v627_v7 = vld [vmem:[%s284_s13] sm:$0xff] (!%p276_p11)   ;;  %326 = vperm.xlu0 (!%p276_p11), %626, %v322_v6   ;;  %s291_s29 = scalar_lea.vmem (!%p276_p11), [#allocation3], %s549_s28  ;;  %s316_s30 = scalar_lea.vmem (!%p276_p11), [#allocation4], %s549_s28 }
  0x2a   : > { %562 = vmatpush3.bf16.msra.mxu0 (!%p276_p11), %v627_v7  ;;  %v392_v15 = vld [vmem:[%s291_s29] sm:$0xff] (!%p276_p11)  ;;  %v393_v20 = vld [vmem:[%s291_s29 + $0x8] sm:$0xff] (!%p276_p11) }
  0x2d   : > { %331 = vperm.xlu0 (!%p276_p11), %626, %v323_v9   ;;  %564 = vmatmul.mubr.msk.bf16.vlgmr.msra.gmra.mrb[0].mxu0 (!%p276_p11), %vm345_vm1, %v628_v8 }
  0x2e   : > { %s555_s6 = sshll.u32 (%p765_p6), %s671_s18, 2 }
  0x2f   : > { %s406_s7 = sadd.s32 (%p765_p6), %s667_s17, %s555_s6 }
  0x30   : > { %s556_s9 = sshll.u32 (%p765_p6), %s406_s7, 3 }
  0x31   : > { %s408_s10 = scalar_lea.vmem (%p765_p6), %s836_s4, %s556_s9 }
  0xa8   : > { %v327_v10 = vpop.permute.xlu0 %326 }
  0xac   : > { %v332_v14 = vpop.permute.xlu0 %331 }
 0x100   : > { %v383_v11 = vpop.f32.mrb[0].mxu0 }
 0x101   : > { %v384_v12 = vadd.f32 %v383_v11, %v327_v10  ;;  %v565_v13 = vpop.f32.mrb[1].mxu0 }
 0x102   : > { %v386_v16 = vpop.f32.mrb[2].mxu0 }
 0x103   : > { %v390_v17 = vmax.f32 %v384_v12, 0.0  ;;  %v387_v18 = vadd.f32 %v386_v16, %v332_v14  ;;  %v566_v19 = vpop.f32.mrb[3].mxu0  ;;  %404 = sbr.rel (!%p765_p6) target bundleno = 274 (0x112), region = 119 }
 0x105   : > { %v394_v21 = vadd.f32 %v392_v15, %v390_v17  ;;  %v391_v22 = vmax.f32 %v387_v18, 0.0 }
 0x107   : > { %396 = vst [vmem:[%s316_s30] sm:$0xff] %v394_v21  ;;  %v395_v23 = vadd.f32 %v393_v20, %v391_v22 }
 0x109   : > { %397 = vst [vmem:[%s316_s30 + $0x8] sm:$0xff] %v395_v23 }
 0x10e   : > { %v438_v24 = vld [vmem:[%s316_s30] sm:$0xff] }
 0x10f   : > { %439 = vst [vmem:[%s408_s10] sm:$0xff] %v438_v24 }
 0x110   : > { %v440_v25 = vld [vmem:[%s316_s30 + $0x8] sm:$0xff] }
 0x111   : > { %441 = vst [vmem:[%s408_s10 + $0x10] sm:$0xff] %v440_v25 }
 0x112 PF: > { %s14_s21 = sadd.s32 1, %s683_s21   ;;  %s839_s15 = smov %s663_s16 }
 0x113   : > { %p11_p12 = scmp.ge.s32.totalorder %s14_s21, 6   ;;  %s840_s16 = smov %s773_s5 }
 0x114   : > { %s841_s17 = smov %s675_s19  ;;  %s842_s18 = smov %s679_s20 }
 0x115   : > { %s843_s19 = smov %s846_s22  ;;  %s844_s20 = smov %s850_s23 }
 0x116   :  { %13 = sbr.rel (!%p11_p12) target bundleno = 4 (0x4), region = 196 }

</bundles_post_ra>
